<compile_context>
chip_gen: v7x
topology: tpu7x:2x2x1
jax: 0.10.0
libtpu: 0.0.40
codegen_flags: <defaults>
</compile_context>

<pallas_src>
import numpy as np
import jax
import jax.numpy as jnp
from jax import lax
from jax.experimental import pallas as pl
from jax.experimental.pallas import tpu as pltpu


_LANE = 128
_TILE_B_MAX = 8192  # (8192, 128) bf16 input tile = 2 MiB; x2 double-buffered = 4 MiB


def _round_up(x, m):
    return -(-x // m) * m


def _choose_tile_b(B):
    """Batch tile: multiple of 128, capped, and >=2 grid steps when possible."""
    Bp = _round_up(max(B, _LANE), _LANE)
    if Bp <= 2 * _LANE:
        return Bp                       # too small to usefully split
    half = _round_up(-(-Bp // 2), _LANE)  # aim for >= 2 steps (v7x megacore)
    return min(_TILE_B_MAX, half)


# ----------------------------- Pallas kernel ------------------------------- #
def _mlp_kernel(x_ref,      # (TB, 2E) bf16   concatenated user|movie embeddings
                w1_ref,     # (2E, 128) bf16
                w2_ref,     # (128, 64) bf16
                w3_ref,     # (64, 32)  bf16
                w4_ref,     # (8, 32)   f32   (row 0 = real w4 row, rows 1..7 zero)
                bias_ref,   # (4, 128)  f32   packed b1|b2|b3|b4 (zero padded)
                o_ref):     # (1, TB)   f32
    b1 = bias_ref[0:1, :]        # (1, 128)
    b2 = bias_ref[1:2, 0:64]     # (1, 64)
    b3 = bias_ref[2:3, 0:32]     # (1, 32)
    b4 = bias_ref[3:4, 0:1]      # (1, 1)

    # Layer 1 (2E=128 -> 128): single K=128 MXU matmul.
    h = jnp.dot(x_ref[...], w1_ref[...], preferred_element_type=jnp.float32) + b1
    h = jnp.maximum(h, 0.0).astype(jnp.bfloat16)
    # Layer 2 (128 -> 64).
    h = jnp.dot(h, w2_ref[...], preferred_element_type=jnp.float32) + b2
    h = jnp.maximum(h, 0.0).astype(jnp.bfloat16)
    # Layer 3 (64 -> 32); keep f32 for the tail.
    h = jnp.dot(h, w3_ref[...], preferred_element_type=jnp.float32) + b3
    h = jnp.maximum(h, 0.0)                                   # (TB, 32) f32

    # Layer 4 (32 -> 1), lane-dense: contract the 32-feature dim of both
    # operands (NT matmul, same dimension numbers as q @ k^T in flash attn)
    # -> (8, TB); row 0 is the real output row.  Avoids masked 1-lane stores
    # and any explicit transpose of the per-row reduction result.
    tail = lax.dot_general(w4_ref[...], h,
                           dimension_numbers=(((1,), (1,)), ((), ())),
                           preferred_element_type=jnp.float32)  # (8, TB)
    o_ref[...] = (tail[0:1, :] + b4).astype(o_ref.dtype)


def _mlp_pallas(x, w1, w2, w3, w4, biases, *, tile_b):
    Bp, twoE = x.shape
    nt = Bp // tile_b

    def const2d(arr):
        # Full-array block, constant index map -> stays VMEM-resident.
        return pl.BlockSpec(arr.shape, lambda i: (0, 0))

    return pl.pallas_call(
        _mlp_kernel,
        out_shape=jax.ShapeDtypeStruct((nt, 1, tile_b), jnp.float32),
        grid=(nt,),
        in_specs=[pl.BlockSpec((tile_b, twoE), lambda i: (i, 0)),
                  const2d(w1), const2d(w2), const2d(w3), const2d(w4),
                  const2d(biases)],
        out_specs=pl.BlockSpec((None, 1, tile_b), lambda i: (i, 0, 0)),
        compiler_params=pltpu.CompilerParams(
            dimension_semantics=("parallel",)),
    )(x, w1, w2, w3, w4, biases)


# ----------------------------- model wrapper ------------------------------- #
def init_params(key, num_users, num_movies, embedding_size=64):
    """Deterministic synthetic parameters (PyTorch-equivalent shapes, f32)."""
    ks = jax.random.split(key, 10)

    def linear(kw, kb, fan_in, fan_out):
        bound = 1.0 / np.sqrt(fan_in)
        # Stored as (in, out) so the kernel computes x @ W + b (== x @ W_pt.T + b)
        w = jax.random.uniform(kw, (fan_in, fan_out), jnp.float32, -bound, bound)
        b = jax.random.uniform(kb, (1, fan_out), jnp.float32, -bound, bound)
        return w, b

    params = {
        "user_emb":  jax.random.normal(ks[0], (num_users, embedding_size), jnp.float32),
        "movie_emb": jax.random.normal(ks[1], (num_movies, embedding_size), jnp.float32),
    }
    params["w1"], params["b1"] = linear(ks[2], ks[3], 2 * embedding_size, 128)
    params["w2"], params["b2"] = linear(ks[4], ks[5], 128, 64)
    params["w3"], params["b3"] = linear(ks[6], ks[7], 64, 32)
    params["w4"], params["b4"] = linear(ks[8], ks[9], 32, 1)
    return params


def _pack_biases(b1, b2, b3, b4):
    rows = [jnp.pad(b.astype(jnp.float32), ((0, 0), (0, _LANE - b.shape[1])))
            for b in (b1, b2, b3, b4)]
    return jnp.concatenate(rows, axis=0)   # (4, 128) f32


def recommender_forward(params, users, movies):
    B = users.shape[0]
    tile_b = _choose_tile_b(B)
    Bp = _round_up(B, tile_b)
    if Bp != B:
        # Pad the (tiny) index arrays; padded rows gather row 0 and are sliced
        # off afterwards.  No extra HBM pass over the gathered activations.
        users = jnp.pad(users, (0, Bp - B))
        movies = jnp.pad(movies, (0, Bp - B))

    # Embedding lookups + concat (glue, plain JAX), streamed to the kernel as
    # one (Bp, 2E) bf16 array so layer 1 is a single K=128 matmul.
    # TODO(synk): fuse the gather into the kernel (scalar-prefetch indices).
    ue = params["user_emb"].astype(jnp.bfloat16)[users]    # (Bp, E)
    me = params["movie_emb"].astype(jnp.bfloat16)[movies]  # (Bp, E)
    x = jnp.concatenate([ue, me], axis=1)                  # (Bp, 2E)

    w1 = params["w1"].astype(jnp.bfloat16)                 # (2E, 128)
    w2 = params["w2"].astype(jnp.bfloat16)                 # (128, 64)
    w3 = params["w3"].astype(jnp.bfloat16)                 # (64, 32)
    w4 = jnp.pad(params["w4"].T.astype(jnp.float32), ((0, 7), (0, 0)))  # (8, 32)
    biases = _pack_biases(params["b1"], params["b2"], params["b3"], params["b4"])

    out = _mlp_pallas(x, w1, w2, w3, w4, biases, tile_b=tile_b)  # (nt, 1, tile_b)
    return out.reshape(Bp, 1)[:B]                                # (B, 1)


# ----------------------------- reference (JAX) ----------------------------- #
def recommender_ref(params, users, movies):
    ue = params["user_emb"][users]
    me = params["movie_emb"][movies]
    h = jnp.concatenate([ue, me], axis=1).astype(jnp.float32)
    h = jnp.maximum(h @ params["w1"] + params["b1"], 0.0)
    h = jnp.maximum(h @ params["w2"] + params["b2"], 0.0)
    h = jnp.maximum(h @ params["w3"] + params["b3"], 0.0)
    return h @ params["w4"] + params["b4"]


if __name__ == "__main__":
    num_users, num_movies, embedding_size = 100, 200, 64
    batch = 8

    key = jax.random.PRNGKey(0)
    k_params, k_users, k_movies = jax.random.split(key, 3)

    params = init_params(k_params, num_users, num_movies, embedding_size)
    users = jax.random.randint(k_users, (batch,), 0, num_users, dtype=jnp.int32)
    movies = jax.random.randint(k_movies, (batch,), 0, num_movies, dtype=jnp.int32)

    fwd = jax.jit(recommender_forward)
    out = jax.block_until_ready(fwd(params, users, movies))
    ref = jax.block_until_ready(recommender_ref(params, users, movies))

    assert out.shape == (batch, 1), out.shape
    # bf16 activation/weight path -> loosened tolerance vs. the f32 reference.
    np.testing.assert_allclose(np.asarray(out), np.asarray(ref), rtol=5e-2, atol=5e-2)
    print("KERNEL_OK")
</pallas_src>

<mosaic_0001>
module attributes {stable_mosaic.version = 11 : i64} {
  func.func @_mlp_kernel(%arg0: i32, %arg1: memref<128x128xbf16, #tpu.memory_space<vmem>>, %arg2: memref<128x128xbf16, #tpu.memory_space<vmem>>, %arg3: memref<128x64xbf16, #tpu.memory_space<vmem>>, %arg4: memref<64x32xbf16, #tpu.memory_space<vmem>>, %arg5: memref<8x32xf32, #tpu.memory_space<vmem>>, %arg6: memref<4x128xf32, #tpu.memory_space<vmem>>, %arg7: memref<1x1x128xf32, #tpu.memory_space<vmem>>) attributes {dimension_semantics = [#tpu.dimension_semantics<parallel>], iteration_bounds = array<i64: 1>, scalar_prefetch = 0 : i64, scratch_operands = 0 : i64, tpu.core_type = #tpu.core_type<tc>, window_params = [{transform_indices = @transform_0, window_bounds = array<i64: 128, 128>}, {pipeline_mode = #tpu.pipeline_mode<synchronous>, transform_indices = @transform_1, window_bounds = array<i64: 128, 128>}, {pipeline_mode = #tpu.pipeline_mode<synchronous>, transform_indices = @transform_2, window_bounds = array<i64: 128, 64>}, {pipeline_mode = #tpu.pipeline_mode<synchronous>, transform_indices = @transform_3, window_bounds = array<i64: 64, 32>}, {pipeline_mode = #tpu.pipeline_mode<synchronous>, transform_indices = @transform_4, window_bounds = array<i64: 8, 32>}, {pipeline_mode = #tpu.pipeline_mode<synchronous>, transform_indices = @transform_5, window_bounds = array<i64: 4, 128>}, {transform_indices = @transform_6, window_bounds = array<i64: 1, 1, 128>}]} {
    %c0 = arith.constant 0 : index
    %c0_0 = arith.constant 0 : index
    %0 = vector.load %arg6[%c0, %c0_0] : memref<4x128xf32, #tpu.memory_space<vmem>>, vector<1x128xf32>
    %c1 = arith.constant 1 : index
    %c0_1 = arith.constant 0 : index
    %1 = vector.load %arg6[%c1, %c0_1] : memref<4x128xf32, #tpu.memory_space<vmem>>, vector<1x64xf32>
    %c2 = arith.constant 2 : index
    %c0_2 = arith.constant 0 : index
    %2 = vector.load %arg6[%c2, %c0_2] : memref<4x128xf32, #tpu.memory_space<vmem>>, vector<1x32xf32>
    %c3 = arith.constant 3 : index
    %c0_3 = arith.constant 0 : index
    %3 = vector.load %arg6[%c3, %c0_3] : memref<4x128xf32, #tpu.memory_space<vmem>>, vector<1x1xf32>
    %c0_4 = arith.constant 0 : index
    %c0_5 = arith.constant 0 : index
    %4 = vector.load %arg1[%c0_4, %c0_5] : memref<128x128xbf16, #tpu.memory_space<vmem>>, vector<128x128xbf16>
    %c0_6 = arith.constant 0 : index
    %c0_7 = arith.constant 0 : index
    %5 = vector.load %arg2[%c0_6, %c0_7] : memref<128x128xbf16, #tpu.memory_space<vmem>>, vector<128x128xbf16>
    %cst = arith.constant dense<0.000000e+00> : vector<128x128xf32>
    %6 = tpu.matmul %4, %5, %cst {dimension_numbers = #tpu.dot_dimension_numbers<[1], [0], [0], [1], [0, 0, 1, 1], [], []>} : vector<128x128xbf16>, vector<128x128xbf16>, vector<128x128xf32> -> vector<128x128xf32>
    %7 = vector.broadcast %0 : vector<1x128xf32> to vector<128x128xf32>
    %8 = arith.addf %6, %7 : vector<128x128xf32>
    %cst_8 = arith.constant 0.000000e+00 : f32
    %9 = vector.broadcast %cst_8 : f32 to vector<128x128xf32>
    %10 = arith.maximumf %8, %9 : vector<128x128xf32>
    %11 = arith.truncf %10 : vector<128x128xf32> to vector<128x128xbf16>
    %c0_9 = arith.constant 0 : index
    %c0_10 = arith.constant 0 : index
    %12 = vector.load %arg3[%c0_9, %c0_10] : memref<128x64xbf16, #tpu.memory_space<vmem>>, vector<128x64xbf16>
    %cst_11 = arith.constant dense<0.000000e+00> : vector<128x64xf32>
    %13 = tpu.matmul %11, %12, %cst_11 {dimension_numbers = #tpu.dot_dimension_numbers<[1], [0], [0], [1], [0, 0, 1, 1], [], []>} : vector<128x128xbf16>, vector<128x64xbf16>, vector<128x64xf32> -> vector<128x64xf32>
    %14 = vector.broadcast %1 : vector<1x64xf32> to vector<128x64xf32>
    %15 = arith.addf %13, %14 : vector<128x64xf32>
    %cst_12 = arith.constant 0.000000e+00 : f32
    %16 = vector.broadcast %cst_12 : f32 to vector<128x64xf32>
    %17 = arith.maximumf %15, %16 : vector<128x64xf32>
    %18 = arith.truncf %17 : vector<128x64xf32> to vector<128x64xbf16>
    %c0_13 = arith.constant 0 : index
    %c0_14 = arith.constant 0 : index
    %19 = vector.load %arg4[%c0_13, %c0_14] : memref<64x32xbf16, #tpu.memory_space<vmem>>, vector<64x32xbf16>
    %cst_15 = arith.constant dense<0.000000e+00> : vector<128x32xf32>
    %20 = tpu.matmul %18, %19, %cst_15 {dimension_numbers = #tpu.dot_dimension_numbers<[1], [0], [0], [1], [0, 0, 1, 1], [], []>} : vector<128x64xbf16>, vector<64x32xbf16>, vector<128x32xf32> -> vector<128x32xf32>
    %21 = vector.broadcast %2 : vector<1x32xf32> to vector<128x32xf32>
    %22 = arith.addf %20, %21 : vector<128x32xf32>
    %cst_16 = arith.constant 0.000000e+00 : f32
    %23 = vector.broadcast %cst_16 : f32 to vector<128x32xf32>
    %24 = arith.maximumf %22, %23 : vector<128x32xf32>
    %c0_17 = arith.constant 0 : index
    %c0_18 = arith.constant 0 : index
    %25 = vector.load %arg5[%c0_17, %c0_18] : memref<8x32xf32, #tpu.memory_space<vmem>>, vector<8x32xf32>
    %cst_19 = arith.constant dense<0.000000e+00> : vector<8x128xf32>
    %26 = tpu.matmul %25, %24, %cst_19 {dimension_numbers = #tpu.dot_dimension_numbers<[1], [1], [0], [0], [0, 0, 1, 0], [], []>} : vector<8x32xf32>, vector<128x32xf32>, vector<8x128xf32> -> vector<8x128xf32>
    %27 = vector.extract_strided_slice %26 {offsets = [0, 0], sizes = [1, 128], strides = [1, 1]} : vector<8x128xf32> to vector<1x128xf32>
    %28 = vector.broadcast %3 : vector<1x1xf32> to vector<1x128xf32>
    %29 = arith.addf %27, %28 : vector<1x128xf32>
    %c0_20 = arith.constant 0 : index
    %c0_21 = arith.constant 0 : index
    %c0_22 = arith.constant 0 : index
    %30 = vector.load %arg7[%c0_20, %c0_21, %c0_22] : memref<1x1x128xf32, #tpu.memory_space<vmem>>, vector<1x1x128xf32>
    %31 = vector.shape_cast %30 : vector<1x1x128xf32> to vector<1x128xf32>
    %32 = vector.shape_cast %29 : vector<1x128xf32> to vector<1x1x128xf32>
    tpu.vector_store %arg7[%c0_20, %c0_21, %c0_22], %32 {strides = array<i32>} : memref<1x1x128xf32, #tpu.memory_space<vmem>>, vector<1x1x128xf32>,
    return
  }
  func.func @transform_0(%arg0: i32) -> (i32, i32) {
    %c0_i32 = arith.constant 0 : i32
    %c0_i32_0 = arith.constant 0 : i32
    return %arg0, %c0_i32 : i32, i32
  }
  func.func @transform_1(%arg0: i32) -> (i32, i32) {
    %c0_i32 = arith.constant 0 : i32
    %c0_i32_0 = arith.constant 0 : i32
    %c0_i32_1 = arith.constant 0 : i32
    return %c0_i32, %c0_i32_0 : i32, i32
  }
  func.func @transform_2(%arg0: i32) -> (i32, i32) {
    %c0_i32 = arith.constant 0 : i32
    %c0_i32_0 = arith.constant 0 : i32
    %c0_i32_1 = arith.constant 0 : i32
    return %c0_i32, %c0_i32_0 : i32, i32
  }
  func.func @transform_3(%arg0: i32) -> (i32, i32) {
    %c0_i32 = arith.constant 0 : i32
    %c0_i32_0 = arith.constant 0 : i32
    %c0_i32_1 = arith.constant 0 : i32
    return %c0_i32, %c0_i32_0 : i32, i32
  }
  func.func @transform_4(%arg0: i32) -> (i32, i32) {
    %c0_i32 = arith.constant 0 : i32
    %c0_i32_0 = arith.constant 0 : i32
    %c0_i32_1 = arith.constant 0 : i32
    return %c0_i32, %c0_i32_0 : i32, i32
  }
  func.func @transform_5(%arg0: i32) -> (i32, i32) {
    %c0_i32 = arith.constant 0 : i32
    %c0_i32_0 = arith.constant 0 : i32
    %c0_i32_1 = arith.constant 0 : i32
    return %c0_i32, %c0_i32_0 : i32, i32
  }
  func.func @transform_6(%arg0: i32) -> (i32, i32, i32) {
    %c0_i32 = arith.constant 0 : i32
    %c0_i32_0 = arith.constant 0 : i32
    %c0_i32_1 = arith.constant 0 : i32
    return %arg0, %c0_i32, %c0_i32_0 : i32, i32, i32
  }
}

</mosaic_0001>

<bundles_post_ra>
// kernel: recommender_forward.1
= control target key start
LH: loop header
LB: loop body
LE: loop exit
PB: predicated region body
PF: predicated region fallthrough
CT: control target
= control target key end

     0   :  { %vm506_vm0 = vcmask 523264   ;;  %vm1084_vm1 = vmmov 0   ;;  %vm645_vm2 = vcmask 261120   ;;  %s1263_s1 = inlined_call_operand.vmem [shape: bf16[128,128], index: 1, kind: input, shape index: {}]   ;;  %s1264_s0 = inlined_call_operand.vmem [shape: bf16[128,128], index: 0, kind: input, shape index: {}]   ;;  %s1265_s2 = inlined_call_operand.vmem [shape: bf16[128,64], index: 2, kind: input, shape index: {}]   ;;  %s1266_s3 = inlined_call_operand.vmem [shape: bf16[64,32], index: 3, kind: input, shape index: {}]   ;;  %s1267_s5 = inlined_call_operand.vmem [shape: f32[4,128], index: 5, kind: input, shape index: {}]   ;;  %s1268_s4 = inlined_call_operand.vmem [shape: f32[8,32], index: 4, kind: input, shape index: {}]   ;;  %s1269_s6 = inlined_call_operand.vmem [shape: f32[1,1,128], index: 6, kind: output, shape index: {}]  }
   0x1   :  { %v1055_v0 = vld [vmem:[%s1263_s1] sm:$0xff]   ;;  %v1056_v1 = vld [vmem:[%s1263_s1 + $0x8] sm:$0xff]   ;;  %v1057_v2 = vld [vmem:[%s1263_s1 + $0x10] sm:$0xff]  }
   0x2   :  { %895 = vmatprep.subr.bf16.mxu0 %v1055_v0  ;;  %v1058_v3 = vld [vmem:[%s1263_s1 + $0x18] sm:$0xff]   ;;  %v1063_v4 = vld [vmem:[%s1264_s0] sm:$0xff]   ;;  %v1060_v6 = vld [vmem:[%s1263_s1 + $0x28] sm:$0xff]  }
   0x3   :  { %896 = vmatpush3.bf16.msra.mxu0 %v1055_v0  ;;  %911 = vmatprep.mubr.bf16.mxu0 %v1063_v4  ;;  %v1059_v5 = vld [vmem:[%s1263_s1 + $0x20] sm:$0xff]   ;;  %v1072_v8 = vld [vmem:[%s1265_s2 + $0x8] sm:$0xff]   ;;  %v1061_v9 = vld [vmem:[%s1263_s1 + $0x30] sm:$0xff]  }
   0x4   :  { %897 = vmatprep.subr.bf16.mxu0 %v1056_v1  ;;  %v1071_v7 = vld [vmem:[%s1265_s2] sm:$0xff]   ;;  %v1073_v10 = vld [vmem:[%s1265_s2 + $0x10] sm:$0xff]   ;;  %v1062_v11 = vld [vmem:[%s1263_s1 + $0x38] sm:$0xff]  }
   0x5   :  { %927 = vmatprep.subr.bf16.mxu1 %v1071_v7  ;;  %v1074_v12 = vld [vmem:[%s1265_s2 + $0x18] sm:$0xff]   ;;  %v1075_v13 = vld [vmem:[%s1265_s2 + $0x20] sm:$0xff]   ;;  %v1064_v14 = vld [vmem:[%s1264_s0 + $0x8] sm:$0xff]  }
   0x6   :  { %928 = vmatpush3.bf16.msra.mxu1 %v1071_v7  ;;  %v1065_v15 = vld [vmem:[%s1264_s0 + $0x10] sm:$0xff]   ;;  %v1076_v16 = vld [vmem:[%s1265_s2 + $0x28] sm:$0xff]   ;;  %v1066_v17 = vld [vmem:[%s1264_s0 + $0x18] sm:$0xff]  }
   0x7   :  { %898 = vmatpush3.bf16.msra.mxu0 %v1056_v1  ;;  %929 = vmatprep.subr.bf16.mxu1 %v1072_v8  ;;  %v1067_v18 = vld [vmem:[%s1264_s0 + $0x20] sm:$0xff]   ;;  %v1068_v19 = vld [vmem:[%s1264_s0 + $0x28] sm:$0xff]   ;;  %v1069_v20 = vld [vmem:[%s1264_s0 + $0x30] sm:$0xff]  }
   0x8   :  { %899 = vmatprep.subr.bf16.mxu0 %v1057_v2  ;;  %v1070_v21 = vld [vmem:[%s1264_s0 + $0x38] sm:$0xff]   ;;  %v1077_v22 = vld [vmem:[%s1265_s2 + $0x30] sm:$0xff]   ;;  %v1079_v24 = vld [vmem:[%s1266_s3] sm:$0xff]  }
   0x9   :  { %v1078_v23 = vld [vmem:[%s1265_s2 + $0x38] sm:$0xff]   ;;  %v1080_v25 = vld [vmem:[%s1266_s3 + $0x8] sm:$0xff]   ;;  %v1081_v26 = vld [vmem:[%s1266_s3 + $0x10] sm:$0xff]  }
   0xa   :  { %930 = vmatpush3.bf16.msra.mxu1 %v1072_v8  ;;  %v778_v27 = vld [vmem:[%s1267_s5] ss:$0 sm:$0xff]  ;;  %vm1229_vm3 = vmpackc.low %vm645_vm2, %vm645_vm2 }
   0xb   :  { %900 = vmatpush3.bf16.msra.mxu0 %v1057_v2  ;;  %931 = vmatprep.subr.bf16.mxu1 %v1073_v10 }
   0xc   :  { %901 = vmatprep.subr.bf16.mxu0 %v1058_v3 }
   0xe   :  { %932 = vmatpush3.bf16.msra.mxu1 %v1073_v10 }
   0xf   :  { %902 = vmatpush3.bf16.msra.mxu0 %v1058_v3  ;;  %933 = vmatprep.subr.bf16.mxu1 %v1074_v12 }
  0x10   :  { %903 = vmatprep.subr.bf16.mxu0 %v1059_v5 }
  0x12   :  { %934 = vmatpush3.bf16.msra.mxu1 %v1074_v12 }
  0x13   :  { %904 = vmatpush3.bf16.msra.mxu0 %v1059_v5  ;;  %935 = vmatprep.subr.bf16.mxu1 %v1075_v13 }
  0x14   :  { %905 = vmatprep.subr.bf16.mxu0 %v1060_v6 }
  0x16   :  { %936 = vmatpush3.bf16.msra.mxu1 %v1075_v13 }
  0x17   :  { %906 = vmatpush3.bf16.msra.mxu0 %v1060_v6  ;;  %937 = vmatprep.subr.bf16.mxu1 %v1076_v16 }
  0x18   :  { %907 = vmatprep.subr.bf16.mxu0 %v1061_v9 }
  0x1a   :  { %938 = vmatpush3.bf16.msra.mxu1 %v1076_v16 }
  0x1b   :  { %908 = vmatpush3.bf16.msra.mxu0 %v1061_v9  ;;  %939 = vmatprep.subr.bf16.mxu1 %v1077_v22 }
  0x1c   :  { %909 = vmatprep.subr.bf16.mxu0 %v1062_v11 }
  0x1e   :  { %940 = vmatpush3.bf16.msra.mxu1 %v1077_v22 }
  0x1f   :  { %910 = vmatpush3.bf16.msra.mxu0 %v1062_v11  ;;  %941 = vmatprep.subr.bf16.mxu1 %v1078_v23 }
  0x20   :  { %959 = vmatprep.subr.bf16.mxu0 %v1079_v24 }
  0x22   :  { %912 = vmatmul.mubr.bf16.vlgmr.msra.gmra.mrb[0].mxu0 %v1064_v14  ;;  %942 = vmatpush3.bf16.msra.mxu1 %v1078_v23 }
  0x23   :  { %915 = vmatprep.mubr.bf16.mxu0 %v1065_v15  ;;  %960 = vmatpush3.bf16.msra.mxu0 %v1079_v24 }
  0x24   :  { %961 = vmatprep.subr.bf16.mxu0 %v1080_v25 }
  0x27   :  { %962 = vmatpush3.bf16.msra.mxu0 %v1080_v25 }
  0x28   :  { %963 = vmatprep.subr.bf16.mxu0 %v1081_v26 }
  0x2a   :  { %916 = vmatmul.mubr.bf16.gmra.mrb[4].mxu0 %v1066_v17 }
  0x2b   :  { %919 = vmatprep.mubr.bf16.mxu0 %v1067_v18  ;;  %964 = vmatpush3.bf16.msra.mxu0 %v1081_v26 }
  0x32   :  { %920 = vmatmul.mubr.bf16.gmra.mrb[8].mxu0 %v1068_v19 }
  0x33   :  { %923 = vmatprep.mubr.bf16.mxu0 %v1069_v20  ;;  %v1082_v20 = vld [vmem:[%s1266_s3 + $0x18] sm:$0xff]  }
  0x34   :  { %965 = vmatprep.subr.bf16.mxu0 %v1082_v20 }
  0x35   :  { %966 = vmatpush3.bf16.msra.mxu0 %v1082_v20 }
  0x3a   :  { %924 = vmatmul.mubr.bf16.gmra.mrb[12].mxu0 %v1070_v21  ;;  %v795_v21 = vld [vmem:[%s1267_s5 + $0x1] ss:$0 sm:$0xff] }
  0xf5   :  { %v913_v28 = vpop.f32.mrb[0].mxu0 }
  0xf6   :  { %v203_v29 = vadd.f32 %v913_v28, %v778_v27  ;;  %v194_v30 = vpop.f32.mrb[1].mxu0 }
  0xf7   :  { %v195_v31 = vadd.f32 %v778_v27, %v194_v30  ;;  %v914_v32 = vpop.f32.mrb[2].mxu0 }
  0xf8   :  { %v206_v33 = vadd.f32 %v914_v32, %v778_v27  ;;  %v197_v34 = vpop.f32.mrb[3].mxu0  ;;  %v259_v36 = vmax.f32 %v203_v29, 0.0 }
  0xf9   :  { %v198_v35 = vadd.f32 %v778_v27, %v197_v34  ;;  %v257_v38 = vmax.f32 %v195_v31, 0.0 }
  0xfa   :  { %v260_v37 = vmax.f32 %v206_v33, 0.0 }
  0xfb   :  { %v258_v39 = vmax.f32 %v198_v35, 0.0 }
  0xfc   :  { %v274_v40 = vpack.c.bf16 %v260_v37, %v259_v36 }
  0xfd   :  { %v917_v41 = vpop.f32.mrb[4].mxu0  ;;  %v273_v42 = vpack.c.bf16 %v258_v39, %v257_v38 }
  0xfe   :  { %v219_v43 = vadd.f32 %v917_v41, %v778_v27  ;;  %v210_v44 = vpop.f32.mrb[5].mxu0 }
  0xff   :  { %v211_v45 = vadd.f32 %v778_v27, %v210_v44  ;;  %v918_v46 = vpop.f32.mrb[6].mxu0  ;;  %943 = vmatprep.mubr.bf16.mxu1 %v273_v42 }
 0x100   :  { %v263_v47 = vmax.f32 %v219_v43, 0.0  ;;  %v222_v48 = vadd.f32 %v918_v46, %v778_v27  ;;  %v213_v49 = vpop.f32.mrb[7].mxu0  ;;  %944 = vmatmul.mubr.bf16.vlgmr.msra.gmra.mrb[0].mxu1 %v274_v40 }
 0x101   :  { %v261_v50 = vmax.f32 %v211_v45, 0.0  ;;  %v214_v51 = vadd.f32 %v778_v27, %v213_v49 }
 0x102   :  { %v264_v52 = vmax.f32 %v222_v48, 0.0 }
 0x103   :  { %v262_v53 = vmax.f32 %v214_v51, 0.0 }
 0x104   :  { %v276_v54 = vpack.c.bf16 %v264_v52, %v263_v47 }
 0x105   :  { %v275_v55 = vpack.c.bf16 %v262_v53, %v261_v50  ;;  %v921_v56 = vpop.f32.mrb[8].mxu0 }
 0x106   :  { %v235_v57 = vadd.f32 %v921_v56, %v778_v27  ;;  %v226_v58 = vpop.f32.mrb[9].mxu0 }
 0x107   :  { %947 = vmatprep.mubr.bf16.mxu1 %v275_v55  ;;  %v227_v59 = vadd.f32 %v778_v27, %v226_v58  ;;  %v922_v60 = vpop.f32.mrb[10].mxu0 }
 0x108   :  { %948 = vmatmul.mubr.bf16.gmra.mrb[4].mxu1 %v276_v54  ;;  %v267_v61 = vmax.f32 %v235_v57, 0.0  ;;  %v238_v62 = vadd.f32 %v922_v60, %v778_v27  ;;  %v229_v63 = vpop.f32.mrb[11].mxu0 }
 0x109   :  { %v265_v0 = vmax.f32 %v227_v59, 0.0  ;;  %v230_v1 = vadd.f32 %v778_v27, %v229_v63 }
 0x10a   :  { %v268_v2 = vmax.f32 %v238_v62, 0.0 }
 0x10b   :  { %v266_v3 = vmax.f32 %v230_v1, 0.0 }
 0x10c   :  { %v278_v4 = vpack.c.bf16 %v268_v2, %v267_v61 }
 0x10d   :  { %v277_v5 = vpack.c.bf16 %v266_v3, %v265_v0  ;;  %v925_v6 = vpop.f32.mrb[12].mxu0 }
 0x10e   :  { %v251_v7 = vadd.f32 %v925_v6, %v778_v27  ;;  %v242_v8 = vpop.f32.mrb[13].mxu0 }
 0x10f   :  { %951 = vmatprep.mubr.bf16.mxu1 %v277_v5  ;;  %v243_v9 = vadd.f32 %v778_v27, %v242_v8  ;;  %v926_v10 = vpop.f32.mrb[14].mxu0 }
 0x110   :  { %952 = vmatmul.mubr.bf16.gmra.mrb[8].mxu1 %v278_v4  ;;  %v271_v11 = vmax.f32 %v251_v7, 0.0  ;;  %v254_v12 = vadd.f32 %v926_v10, %v778_v27  ;;  %v245_v13 = vpop.f32.mrb[15].mxu0 }
 0x111   :  { %v269_v14 = vmax.f32 %v243_v9, 0.0  ;;  %v246_v15 = vadd.f32 %v778_v27, %v245_v13 }
 0x112   :  { %v272_v16 = vmax.f32 %v254_v12, 0.0 }
 0x113   :  { %v270_v17 = vmax.f32 %v246_v15, 0.0  ;;  %v1085_v15 = vmov 0.0  }
 0x114   :  { %v280_v18 = vpack.c.bf16 %v272_v16, %v271_v11  ;;  %v27_v16 = vld [vmem:[%s1267_s5 + $0x3] sm:$0x1] }
 0x115   :  { %v279_v19 = vpack.c.bf16 %v270_v17, %v269_v14  ;;  %v1083_v14 = vmov 0.0|0.0   ;;  %v1086_v17 = vmov 0  }
 0x116   :  { %1018 = vmatprep.subr.bf16.mxu1 %v1083_v14  ;;  %1054 = vset.pattern.permute.xlu0 %v1086_v17 }
 0x117   :  { %955 = vmatprep.mubr.bf16.mxu1 %v279_v19  ;;  %769 = vperm.xlu0 %1054, %v27_v16  }
 0x118   :  { %956 = vmatmul.mubr.bf16.gmra.mrb[12].mxu1 %v280_v18  ;;  %v804_v18 = vld [vmem:[%s1267_s5 + $0x2] ss:$0 sm:$0xff] }
 0x119   :  { %1015 = vmatprep.mubr.msk.f32.mxu1 %vm1084_vm1, %v1085_v15 }
 0x1d3   :  { %v945_v22 = vpop.f32.mrb[0].mxu1 }
 0x1d4   :  { %v392_v23 = vadd.f32 %v945_v22, %v795_v21  ;;  %v383_v24 = vpop.f32.mrb[1].mxu1 }
 0x1d5   :  { %v384_v25 = vadd.f32 %v795_v21, %v383_v24  ;;  %v946_v26 = vpop.f32.mrb[2].mxu1 }
 0x1d6   :  { %v395_v27 = vadd.f32 %v946_v26, %v795_v21  ;;  %v386_v28 = vpop.f32.mrb[3].mxu1  ;;  %v448_v30 = vmax.f32 %v392_v23, 0.0 }
 0x1d7   :  { %v387_v29 = vadd.f32 %v795_v21, %v386_v28  ;;  %v446_v32 = vmax.f32 %v384_v25, 0.0 }
 0x1d8   :  { %v449_v31 = vmax.f32 %v395_v27, 0.0 }
 0x1d9   :  { %v447_v33 = vmax.f32 %v387_v29, 0.0 }
 0x1da   :  { %v463_v34 = vpack.c.bf16 %v449_v31, %v448_v30 }
 0x1db   :  { %v462_v35 = vpack.c.bf16 %v447_v33, %v446_v32  ;;  %v949_v36 = vpop.f32.mrb[4].mxu1 }
 0x1dc   :  { %v408_v37 = vadd.f32 %v949_v36, %v795_v21  ;;  %v399_v38 = vpop.f32.mrb[5].mxu1 }
 0x1dd   :  { %v400_v39 = vadd.f32 %v795_v21, %v399_v38  ;;  %v950_v40 = vpop.f32.mrb[6].mxu1  ;;  %967 = vmatprep.mubr.msk.bf16.mxu0 %vm506_vm0, %v462_v35 }
 0x1de   :  { %v452_v41 = vmax.f32 %v408_v37, 0.0  ;;  %v411_v42 = vadd.f32 %v950_v40, %v795_v21  ;;  %v402_v43 = vpop.f32.mrb[7].mxu1  ;;  %968 = vmatmul.mubr.msk.bf16.vlgmr.msra.gmra.mrb[16].mxu0 %vm506_vm0, %v463_v34 }
 0x1df   :  { %v450_v44 = vmax.f32 %v400_v39, 0.0  ;;  %v403_v45 = vadd.f32 %v795_v21, %v402_v43 }
 0x1e0   :  { %v453_v46 = vmax.f32 %v411_v42, 0.0 }
 0x1e1   :  { %v451_v47 = vmax.f32 %v403_v45, 0.0 }
 0x1e2   :  { %v465_v48 = vpack.c.bf16 %v453_v46, %v452_v41 }
 0x1e3   :  { %v464_v49 = vpack.c.bf16 %v451_v47, %v450_v44  ;;  %v953_v50 = vpop.f32.mrb[8].mxu1 }
 0x1e4   :  { %v424_v51 = vadd.f32 %v953_v50, %v795_v21  ;;  %v415_v52 = vpop.f32.mrb[9].mxu1 }
 0x1e5   :  { %971 = vmatprep.mubr.msk.bf16.mxu0 %vm506_vm0, %v464_v49  ;;  %v416_v53 = vadd.f32 %v795_v21, %v415_v52  ;;  %v954_v54 = vpop.f32.mrb[10].mxu1 }
 0x1e6   :  { %972 = vmatmul.mubr.msk.bf16.gmra.mrb[20].mxu0 %vm506_vm0, %v465_v48  ;;  %v456_v55 = vmax.f32 %v424_v51, 0.0  ;;  %v427_v56 = vadd.f32 %v954_v54, %v795_v21  ;;  %v418_v57 = vpop.f32.mrb[11].mxu1 }
 0x1e7   :  { %v454_v58 = vmax.f32 %v416_v53, 0.0  ;;  %v419_v59 = vadd.f32 %v795_v21, %v418_v57 }
 0x1e8   :  { %v457_v60 = vmax.f32 %v427_v56, 0.0 }
 0x1e9   :  { %v455_v61 = vmax.f32 %v419_v59, 0.0 }
 0x1ea   :  { %v467_v62 = vpack.c.bf16 %v457_v60, %v456_v55 }
 0x1eb   :  { %v466_v63 = vpack.c.bf16 %v455_v61, %v454_v58  ;;  %v957_v0 = vpop.f32.mrb[12].mxu1 }
 0x1ec   :  { %v440_v1 = vadd.f32 %v957_v0, %v795_v21  ;;  %v431_v2 = vpop.f32.mrb[13].mxu1 }
 0x1ed   :  { %975 = vmatprep.mubr.msk.bf16.mxu0 %vm506_vm0, %v466_v63  ;;  %v432_v3 = vadd.f32 %v795_v21, %v431_v2  ;;  %v958_v4 = vpop.f32.mrb[14].mxu1 }
 0x1ee   :  { %976 = vmatmul.mubr.msk.bf16.gmra.mrb[24].mxu0 %vm506_vm0, %v467_v62  ;;  %v460_v5 = vmax.f32 %v440_v1, 0.0  ;;  %v443_v6 = vadd.f32 %v958_v4, %v795_v21  ;;  %v434_v7 = vpop.f32.mrb[15].mxu1 }
 0x1ef   :  { %v458_v8 = vmax.f32 %v432_v3, 0.0  ;;  %v435_v9 = vadd.f32 %v795_v21, %v434_v7 }
 0x1f0   :  { %v461_v10 = vmax.f32 %v443_v6, 0.0 }
 0x1f1   :  { %v459_v11 = vmax.f32 %v435_v9, 0.0 }
 0x1f2   :  { %v469_v12 = vpack.c.bf16 %v461_v10, %v460_v5 }
 0x1f3   :  { %v468_v13 = vpack.c.bf16 %v459_v11, %v458_v8 }
 0x1f5   :  { %979 = vmatprep.mubr.msk.bf16.mxu0 %vm506_vm0, %v468_v13  ;;  %v770_v13 = vpop.permute.xlu0 %769 }
 0x1f6   :  { %980 = vmatmul.mubr.msk.bf16.gmra.mrb[28].mxu0 %vm506_vm0, %v469_v12  ;;  %v644_v12 = vld [vmem:[%s1268_s4] sm:$0xff] }
 0x2b1   :  { %v969_v19 = vpop.f32.mrb[16].mxu0 }
 0x2b2   :  { %v574_v20 = vadd.f32 %v969_v19, %v804_v18  ;;  %v565_v21 = vpop.f32.mrb[17].mxu0 }
 0x2b3   :  { %v566_v22 = vadd.f32 %v804_v18, %v565_v21  ;;  %v970_v23 = vpop.f32.mrb[18].mxu0 }
 0x2b4   :  { %v577_v24 = vadd.f32 %v970_v23, %v804_v18  ;;  %v568_v25 = vpop.f32.mrb[19].mxu0  ;;  %v630_v27 = vmax.f32 %v574_v20, 0.0 }
 0x2b5   :  { %v569_v26 = vadd.f32 %v804_v18, %v568_v25  ;;  %v628_v29 = vmax.f32 %v566_v22, 0.0 }
 0x2b6   :  { %v631_v28 = vmax.f32 %v577_v24, 0.0 }
 0x2b7   :  { %v629_v30 = vmax.f32 %v569_v26, 0.0 }
 0x2b8   :  { %v1023_v31 = vpack.c.bf16 %v631_v28, %v630_v27 }
 0x2b9   :  { %v1019_v33 = vpack.c.bf16 %v629_v30, %v628_v29  ;;  %v973_v34 = vpop.f32.mrb[20].mxu0 }
 0x2ba   :  { %v590_v35 = vadd.f32 %v973_v34, %v804_v18  ;;  %v581_v36 = vpop.f32.mrb[21].mxu0 }
 0x2bb   :  { %v582_v37 = vadd.f32 %v804_v18, %v581_v36  ;;  %v974_v38 = vpop.f32.mrb[22].mxu0  ;;  %1021 = vmatpush3.bf16.xpose.msk.msra.mxu1 %vm1229_vm3, %v1019_v33 }
 0x2bc   :  { %v593_v39 = vadd.f32 %v974_v38, %v804_v18  ;;  %v584_v40 = vpop.f32.mrb[23].mxu0  ;;  %1022 = vmatprep.subr.bf16.mxu1 %v1083_v14  ;;  %v634_v42 = vmax.f32 %v590_v35, 0.0 }
 0x2bd   :  { %v585_v41 = vadd.f32 %v804_v18, %v584_v40  ;;  %v632_v44 = vmax.f32 %v582_v37, 0.0 }
 0x2be   :  { %v635_v43 = vmax.f32 %v593_v39, 0.0 }
 0x2bf   :  { %v633_v45 = vmax.f32 %v585_v41, 0.0 }
 0x2c0   :  { %v1031_v46 = vpack.c.bf16 %v635_v43, %v634_v42 }
 0x2c1   :  { %v1027_v47 = vpack.c.bf16 %v633_v45, %v632_v44  ;;  %v977_v48 = vpop.f32.mrb[24].mxu0 }
 0x2c2   :  { %v606_v49 = vadd.f32 %v977_v48, %v804_v18  ;;  %v597_v50 = vpop.f32.mrb[25].mxu0 }
 0x2c3   :  { %1025 = vmatpush3.bf16.xpose.msk.msra.mxu1 %vm1229_vm3, %v1023_v31  ;;  %v598_v51 = vadd.f32 %v804_v18, %v597_v50  ;;  %v978_v52 = vpop.f32.mrb[26].mxu0 }
 0x2c4   :  { %v638_v53 = vmax.f32 %v606_v49, 0.0  ;;  %v609_v54 = vadd.f32 %v978_v52, %v804_v18  ;;  %v600_v55 = vpop.f32.mrb[27].mxu0  ;;  %1026 = vmatprep.subr.bf16.mxu1 %v1083_v14 }
 0x2c5   :  { %v636_v56 = vmax.f32 %v598_v51, 0.0  ;;  %v601_v57 = vadd.f32 %v804_v18, %v600_v55 }
 0x2c6   :  { %v639_v58 = vmax.f32 %v609_v54, 0.0 }
 0x2c7   :  { %v637_v59 = vmax.f32 %v601_v57, 0.0 }
 0x2c8   :  { %v1039_v60 = vpack.c.bf16 %v639_v58, %v638_v53 }
 0x2c9   :  { %v1035_v61 = vpack.c.bf16 %v637_v59, %v636_v56  ;;  %v981_v62 = vpop.f32.mrb[28].mxu0 }
 0x2ca   :  { %v622_v63 = vadd.f32 %v981_v62, %v804_v18  ;;  %v613_v0 = vpop.f32.mrb[29].mxu0 }
 0x2cb   :  { %1029 = vmatpush3.bf16.xpose.msk.msra.mxu1 %vm1229_vm3, %v1027_v47  ;;  %v614_v1 = vadd.f32 %v804_v18, %v613_v0  ;;  %v982_v2 = vpop.f32.mrb[30].mxu0 }
 0x2cc   :  { %1030 = vmatprep.subr.bf16.mxu1 %v1083_v14  ;;  %v642_v3 = vmax.f32 %v622_v63, 0.0  ;;  %v625_v4 = vadd.f32 %v982_v2, %v804_v18  ;;  %v616_v5 = vpop.f32.mrb[31].mxu0 }
 0x2cd   :  { %v640_v6 = vmax.f32 %v614_v1, 0.0  ;;  %v617_v7 = vadd.f32 %v804_v18, %v616_v5 }
 0x2ce   :  { %v643_v8 = vmax.f32 %v625_v4, 0.0 }
 0x2cf   :  { %v641_v9 = vmax.f32 %v617_v7, 0.0 }
 0x2d0   :  { %v1047_v10 = vpack.c.bf16 %v643_v8, %v642_v3 }
 0x2d1   :  { %v1043_v11 = vpack.c.bf16 %v641_v9, %v640_v6 }
 0x2d3   :  { %1033 = vmatpush3.bf16.xpose.msk.msra.mxu1 %vm1229_vm3, %v1031_v46 }
 0x2d4   :  { %1034 = vmatprep.subr.bf16.mxu1 %v1083_v14 }
 0x2db   :  { %1037 = vmatpush3.bf16.xpose.msk.msra.mxu1 %vm1229_vm3, %v1035_v61 }
 0x2dc   :  { %1038 = vmatprep.subr.bf16.mxu1 %v1083_v14 }
 0x2e3   :  { %1041 = vmatpush3.bf16.xpose.msk.msra.mxu1 %vm1229_vm3, %v1039_v60 }
 0x2e4   :  { %1042 = vmatprep.subr.bf16.mxu1 %v1083_v14 }
 0x2eb   :  { %1045 = vmatpush3.bf16.xpose.msk.msra.mxu1 %vm1229_vm3, %v1043_v11 }
 0x2ec   :  { %1046 = vmatprep.subr.bf16.mxu1 %v1083_v14 }
 0x2f3   :  { %1049 = vmatpush3.bf16.xpose.msk.msra.mxu1 %vm1229_vm3, %v1047_v10 }
 0x2fa   :  { %1016 = vmatmul.mubr.msk.f32.vlgmr.msra.gmra.mrb[16].mxu1 %vm645_vm2, %v644_v12 }
 0x3cd   :  { %v763_v15 = vpop.f32.mrb[16].mxu1 }
 0x3ce   :  { %v772_v16 = vadd.f32 %v770_v13, %v763_v15  ;;  %v1017_v17 = vpop.f32.mrb[17].mxu1 }
 0x3d0   :  { %773 = vst [vmem:[%s1269_s6] sm:$0x1] %v772_v16 }

</bundles_post_ra>
